<compile_context>
chip_gen: v7x
topology: tpu7x:2x2x1
jax: 0.10.0
libtpu: 0.0.40
codegen_flags: <defaults>
</compile_context>

<pallas_src>
import functools

import jax
import jax.numpy as jnp
from jax.experimental import pallas as pl
from jax.experimental.pallas import tpu as pltpu

_LANES = 128
_SUBLANES = 8
_MIN_TILE_COLS = _LANES * _SUBLANES  # 1024 samples = one (8,128) vreg of batch


def _focal_loss_kernel(logits_ref, targets_ref, out_ref, *,
                       alpha, gamma, n_valid, c, tile_cols, needs_mask):
    """One batch tile. logits_ref: (C, tile_rows, 128); targets_ref: (tile_rows, 128)."""
    pid = pl.program_id(0)
    t = targets_ref[...]                                     # (tile_rows, 128) int32

    # Class-axis max: C-1 elementwise maxes (pure VALU).  Per-class slices are
    # re-read from VMEM instead of holding C upcast f32 copies live.
    m = logits_ref[0].astype(jnp.float32)
    for cc in range(1, c):
        m = jnp.maximum(m, logits_ref[cc].astype(jnp.float32))

    # One unrolled pass: sum of exp(z_c), the target-class exp and the
    # target-class shifted logit.  Log-probs are never materialized.
    # NOTE: targets are assumed to lie in [0, C) (no ignore_index handling).
    sumexp = jnp.zeros_like(m)
    e_t = jnp.zeros_like(m)
    z_t = jnp.zeros_like(m)
    for cc in range(c):
        z_c = logits_ref[cc].astype(jnp.float32) - m
        p_c = jnp.exp(z_c)
        sel = t == cc
        sumexp = sumexp + p_c
        e_t = e_t + jnp.where(sel, p_c, 0.0)
        z_t = z_t + jnp.where(sel, z_c, 0.0)

    # ce = logsumexp - z_t (one log).  pt = e_t / sumexp via the EUP approx
    # reciprocal + one Newton step (pure VALU) -> full f32 accuracy while saving
    # the exp(-ce) of the naive formulation (EUP count stays C+1 per sample).
    ce = jnp.log(sumexp) - z_t
    inv = pl.reciprocal(sumexp, approx=True)
    inv = inv * (2.0 - sumexp * inv)                         # Newton refine (VALU)
    pt = e_t * inv

    # Focal weight: integer gamma -> multiply chain (VALU), no pow (EUP x2).
    w = jnp.maximum(1.0 - pt, 0.0)
    if float(gamma).is_integer() and 0 <= int(gamma) <= 16:
        wg = jnp.ones_like(w)
        for _ in range(int(gamma)):
            wg = wg * w
    else:
        wg = w ** jnp.float32(gamma)
    focal = jnp.float32(alpha) * wg * ce

    if needs_mask:
        # Only the last tile can contain invalid columns (rows read out-of-bounds
        # by the clamped block DMA, or the tiny-batch pad): mask it there only.
        @pl.when(pid < pl.num_programs(0) - 1)
        def _():
            out_ref[0, 0] = jnp.sum(focal)

        @pl.when(pid == pl.num_programs(0) - 1)
        def _():
            rows = focal.shape[0]
            r_iota = jax.lax.broadcasted_iota(jnp.int32, (rows, _LANES), 0)
            l_iota = jax.lax.broadcasted_iota(jnp.int32, (rows, _LANES), 1)
            col = pid * tile_cols + r_iota * _LANES + l_iota  # int32: assumes N < 2**31
            out_ref[0, 0] = jnp.sum(jnp.where(col < n_valid, focal, 0.0))
    else:
        out_ref[0, 0] = jnp.sum(focal)                        # per-tile partial sum


def _focal_sum_jnp(logits, targets, alpha, gamma):
    """Plain-jnp focal-loss *sum* (used only for the <128-sample ragged tail)."""
    logp = jax.nn.log_softmax(logits.astype(jnp.float32), axis=-1)
    logpt = jnp.take_along_axis(logp, targets.astype(jnp.int32)[:, None], axis=-1)[:, 0]
    ce = -logpt
    pt = jnp.exp(logpt)
    return jnp.sum(jnp.float32(alpha) * (1.0 - pt) ** jnp.float32(gamma) * ce)


def _focal_loss_ref(logits, targets, alpha=1.0, gamma=2.0):
    return _focal_sum_jnp(logits, targets, alpha, gamma) / jnp.float32(logits.shape[0])


@functools.partial(jax.jit, static_argnames=("alpha", "gamma", "max_tile_cols"))
def focal_loss(logits, targets, alpha=1.0, gamma=2.0, *, max_tile_cols=512 * 1024):
    """Mean focal loss.  logits: (N, C) float (f32 or bf16), targets: (N,) int class ids."""
    n, c = logits.shape
    if targets.dtype != jnp.int32:
        targets = targets.astype(jnp.int32)  # no-op when the caller already passes int32

    # --- ragged batch: kernel on the 128-aligned prefix, <128-sample tail in jnp ---
    rows_full = n // _LANES
    rem_sum = jnp.float32(0.0)
    if rows_full == 0:
        pad = _LANES - n                      # tiny batch: pad to a single vreg row only
        logits_k = jnp.pad(logits, ((0, pad), (0, 0)))
        targets_k = jnp.pad(targets, (0, pad))
        rows, n_valid = 1, n
    else:
        n_k = rows_full * _LANES
        logits_k = logits[:n_k] if n_k != n else logits
        targets_k = targets[:n_k] if n_k != n else targets
        rows, n_valid = rows_full, n_k
        if n_k != n:
            rem_sum = _focal_sum_jnp(logits[n_k:], targets[n_k:], alpha, gamma)

    # --- class-major, lane-dense layout: (C, rows, 128); reshape is free, the
    # transpose may fuse into the pallas_call input DMA (allow_input_fusion). ---
    logits_cm = jnp.transpose(logits_k).reshape(c, rows, _LANES)
    targets_2d = targets_k.reshape(rows, _LANES)

    # --- tile selection: biggest batch tile within a conservative VMEM budget
    # (double-buffered inputs + ~12 tile-sized f32 temporaries); keep >=2 grid
    # steps for v7x's two TensorCores when there is enough work. ---
    in_itemsize = jnp.dtype(logits.dtype).itemsize
    bytes_per_sample = 2 * (c * in_itemsize + 4) + 12 * 4
    vmem_cap = 64 * 1024 * 1024               # v7x physical VMEM (smallest generation)
    try:
        vmem_cap = int(getattr(pltpu.get_tpu_info(), "vmem_capacity_bytes", vmem_cap))
    except Exception:
        pass
    budget_cols = (vmem_cap // 6) // bytes_per_sample
    tile_cols = max(_MIN_TILE_COLS, min(max_tile_cols, budget_cols))
    tile_cols = (tile_cols // _MIN_TILE_COLS) * _MIN_TILE_COLS
    tile_rows = tile_cols // _LANES           # multiple of 8
    if rows > 2 * _SUBLANES:                  # enough work: force >=2 grid steps (v7x)
        half_rows = pl.cdiv(pl.cdiv(rows, 2), _SUBLANES) * _SUBLANES
        tile_rows = min(tile_rows, half_rows)
    if tile_rows >= rows:
        tile_rows = rows                      # single full-extent block (always legal)
    grid = pl.cdiv(rows, tile_rows)
    tile_cols = tile_rows * _LANES
    needs_mask = grid * tile_cols != n_valid

    vmem_limit = max(32 << 20, int(2.5 * tile_cols * bytes_per_sample))
    vmem_limit = min(vmem_limit, (vmem_cap * 3) // 4)

    kernel = functools.partial(
        _focal_loss_kernel,
        alpha=float(alpha), gamma=float(gamma), n_valid=n_valid, c=c,
        tile_cols=tile_cols, needs_mask=needs_mask)

    partials = pl.pallas_call(
        kernel,
        out_shape=jax.ShapeDtypeStruct((grid, 1), jnp.float32),
        grid=(grid,),
        in_specs=[
            pl.BlockSpec((c, tile_rows, _LANES), lambda i: (0, i, 0)),
            pl.BlockSpec((tile_rows, _LANES), lambda i: (i, 0)),
        ],
        out_specs=pl.BlockSpec((1, 1), lambda i: (i, 0), memory_space=pltpu.SMEM),
        compiler_params=pltpu.CompilerParams(
            dimension_semantics=("parallel",),
            vmem_limit_bytes=int(vmem_limit),
            allow_input_fusion=[True, True],
        ),
    )(logits_cm, targets_2d)

    # reduction='mean' over the original N samples
    return (jnp.sum(partials) + rem_sum) / jnp.float32(n)


if __name__ == "__main__":
    key = jax.random.PRNGKey(0)
    k1, k2, k3, k4 = jax.random.split(key, 4)

    # Small shape consistent with the module's use (3-class buy/hold/sell head).
    N, C = 8, 3
    logits = jax.random.normal(k1, (N, C), dtype=jnp.float32)
    targets = jax.random.randint(k2, (N,), 0, C, dtype=jnp.int32)
    loss = focal_loss(logits, targets, alpha=1.0, gamma=2.0)
    jax.block_until_ready(loss)
    ref = _focal_loss_ref(logits, targets, 1.0, 2.0)
    assert jnp.allclose(loss, ref, rtol=1e-4, atol=1e-6), (loss, ref)

    # Multi-tile ragged batch: exercises the grid, last-tile-only masking and
    # the <128-sample jnp remainder path (no whole-array pad anywhere).
    N2 = 2500
    logits2 = jax.random.normal(k3, (N2, C), dtype=jnp.float32)
    targets2 = jax.random.randint(k4, (N2,), 0, C, dtype=jnp.int32)
    loss2 = focal_loss(logits2, targets2, alpha=1.0, gamma=2.0,
                       max_tile_cols=1024)  # force several tiles
    jax.block_until_ready(loss2)
    ref2 = _focal_loss_ref(logits2, targets2, 1.0, 2.0)
    assert jnp.allclose(loss2, ref2, rtol=1e-4, atol=1e-6), (loss2, ref2)

    # bf16 logits (halves HBM bytes; kernel upcasts in-register), default tiling.
    logits3 = logits2.astype(jnp.bfloat16)
    loss3 = focal_loss(logits3, targets2, alpha=1.0, gamma=2.0)
    jax.block_until_ready(loss3)
    ref3 = _focal_loss_ref(logits3, targets2, 1.0, 2.0)
    assert jnp.allclose(loss3, ref3, rtol=1e-3, atol=1e-5), (loss3, ref3)

    print("KERNEL_OK")
</pallas_src>

<mosaic_0001>
module attributes {stable_mosaic.version = 11 : i64} {
  func.func @_focal_loss_kernel(%arg0: i32, %arg1: memref<3x1x128xf32, #tpu.memory_space<vmem>>, %arg2: memref<1x128xi32, #tpu.memory_space<vmem>>, %arg3: memref<1x1xf32, #tpu.memory_space<smem>>) attributes {dimension_semantics = [#tpu.dimension_semantics<parallel>], iteration_bounds = array<i64: 1>, scalar_prefetch = 0 : i64, scratch_operands = 0 : i64, tpu.core_type = #tpu.core_type<tc>, window_params = [{transform_indices = @transform_0, window_bounds = array<i64: 3, 1, 128>}, {transform_indices = @transform_1, window_bounds = array<i64: 1, 128>}, {transform_indices = @transform_2, window_bounds = array<i64: 1, 1>}]} {
    %c0 = arith.constant 0 : index
    %c0_0 = arith.constant 0 : index
    %0 = vector.load %arg2[%c0, %c0_0] : memref<1x128xi32, #tpu.memory_space<vmem>>, vector<1x128xi32>
    %c0_1 = arith.constant 0 : index
    %c0_2 = arith.constant 0 : index
    %c0_3 = arith.constant 0 : index
    %1 = vector.load %arg1[%c0_1, %c0_2, %c0_3] : memref<3x1x128xf32, #tpu.memory_space<vmem>>, vector<1x1x128xf32>
    %2 = vector.shape_cast %1 : vector<1x1x128xf32> to vector<1x128xf32>
    %c1 = arith.constant 1 : index
    %c0_4 = arith.constant 0 : index
    %c0_5 = arith.constant 0 : index
    %3 = vector.load %arg1[%c1, %c0_4, %c0_5] : memref<3x1x128xf32, #tpu.memory_space<vmem>>, vector<1x1x128xf32>
    %4 = vector.shape_cast %3 : vector<1x1x128xf32> to vector<1x128xf32>
    %5 = arith.maximumf %2, %4 : vector<1x128xf32>
    %c2 = arith.constant 2 : index
    %c0_6 = arith.constant 0 : index
    %c0_7 = arith.constant 0 : index
    %6 = vector.load %arg1[%c2, %c0_6, %c0_7] : memref<3x1x128xf32, #tpu.memory_space<vmem>>, vector<1x1x128xf32>
    %7 = vector.shape_cast %6 : vector<1x1x128xf32> to vector<1x128xf32>
    %8 = arith.maximumf %5, %7 : vector<1x128xf32>
    %cst = arith.constant 0.000000e+00 : f32
    %9 = vector.broadcast %cst : f32 to vector<1x128xf32>
    %cst_8 = arith.constant 0.000000e+00 : f32
    %10 = vector.broadcast %cst_8 : f32 to vector<1x128xf32>
    %cst_9 = arith.constant 0.000000e+00 : f32
    %11 = vector.broadcast %cst_9 : f32 to vector<1x128xf32>
    %c0_10 = arith.constant 0 : index
    %c0_11 = arith.constant 0 : index
    %c0_12 = arith.constant 0 : index
    %12 = vector.load %arg1[%c0_10, %c0_11, %c0_12] : memref<3x1x128xf32, #tpu.memory_space<vmem>>, vector<1x1x128xf32>
    %13 = vector.shape_cast %12 : vector<1x1x128xf32> to vector<1x128xf32>
    %14 = arith.subf %13, %8 : vector<1x128xf32>
    %15 = math.exp %14 : vector<1x128xf32>
    %c0_i32 = arith.constant 0 : i32
    %16 = vector.broadcast %c0_i32 : i32 to vector<1x128xi32>
    %17 = arith.cmpi eq, %0, %16 : vector<1x128xi32>
    %18 = arith.addf %9, %15 : vector<1x128xf32>
    %cst_13 = arith.constant 0.000000e+00 : f32
    %19 = vector.broadcast %cst_13 : f32 to vector<1x128xf32>
    %20 = arith.select %17, %15, %19 : vector<1x128xi1>, vector<1x128xf32>
    %21 = arith.addf %10, %20 : vector<1x128xf32>
    %cst_14 = arith.constant 0.000000e+00 : f32
    %22 = vector.broadcast %cst_14 : f32 to vector<1x128xf32>
    %23 = arith.select %17, %14, %22 : vector<1x128xi1>, vector<1x128xf32>
    %24 = arith.addf %11, %23 : vector<1x128xf32>
    %c1_15 = arith.constant 1 : index
    %c0_16 = arith.constant 0 : index
    %c0_17 = arith.constant 0 : index
    %25 = vector.load %arg1[%c1_15, %c0_16, %c0_17] : memref<3x1x128xf32, #tpu.memory_space<vmem>>, vector<1x1x128xf32>
    %26 = vector.shape_cast %25 : vector<1x1x128xf32> to vector<1x128xf32>
    %27 = arith.subf %26, %8 : vector<1x128xf32>
    %28 = math.exp %27 : vector<1x128xf32>
    %c1_i32 = arith.constant 1 : i32
    %29 = vector.broadcast %c1_i32 : i32 to vector<1x128xi32>
    %30 = arith.cmpi eq, %0, %29 : vector<1x128xi32>
    %31 = arith.addf %18, %28 : vector<1x128xf32>
    %cst_18 = arith.constant 0.000000e+00 : f32
    %32 = vector.broadcast %cst_18 : f32 to vector<1x128xf32>
    %33 = arith.select %30, %28, %32 : vector<1x128xi1>, vector<1x128xf32>
    %34 = arith.addf %21, %33 : vector<1x128xf32>
    %cst_19 = arith.constant 0.000000e+00 : f32
    %35 = vector.broadcast %cst_19 : f32 to vector<1x128xf32>
    %36 = arith.select %30, %27, %35 : vector<1x128xi1>, vector<1x128xf32>
    %37 = arith.addf %24, %36 : vector<1x128xf32>
    %c2_20 = arith.constant 2 : index
    %c0_21 = arith.constant 0 : index
    %c0_22 = arith.constant 0 : index
    %38 = vector.load %arg1[%c2_20, %c0_21, %c0_22] : memref<3x1x128xf32, #tpu.memory_space<vmem>>, vector<1x1x128xf32>
    %39 = vector.shape_cast %38 : vector<1x1x128xf32> to vector<1x128xf32>
    %40 = arith.subf %39, %8 : vector<1x128xf32>
    %41 = math.exp %40 : vector<1x128xf32>
    %c2_i32 = arith.constant 2 : i32
    %42 = vector.broadcast %c2_i32 : i32 to vector<1x128xi32>
    %43 = arith.cmpi eq, %0, %42 : vector<1x128xi32>
    %44 = arith.addf %31, %41 : vector<1x128xf32>
    %cst_23 = arith.constant 0.000000e+00 : f32
    %45 = vector.broadcast %cst_23 : f32 to vector<1x128xf32>
    %46 = arith.select %43, %41, %45 : vector<1x128xi1>, vector<1x128xf32>
    %47 = arith.addf %34, %46 : vector<1x128xf32>
    %cst_24 = arith.constant 0.000000e+00 : f32
    %48 = vector.broadcast %cst_24 : f32 to vector<1x128xf32>
    %49 = arith.select %43, %40, %48 : vector<1x128xi1>, vector<1x128xf32>
    %50 = arith.addf %37, %49 : vector<1x128xf32>
    %51 = math.log %44 : vector<1x128xf32>
    %52 = arith.subf %51, %50 : vector<1x128xf32>
    %53 = tpu.reciprocal %44 {approx = true} : vector<1x128xf32> -> vector<1x128xf32>
    %54 = arith.mulf %44, %53 : vector<1x128xf32>
    %cst_25 = arith.constant 2.000000e+00 : f32
    %55 = vector.broadcast %cst_25 : f32 to vector<1x128xf32>
    %56 = arith.subf %55, %54 : vector<1x128xf32>
    %57 = arith.mulf %53, %56 : vector<1x128xf32>
    %58 = arith.mulf %47, %57 : vector<1x128xf32>
    %cst_26 = arith.constant 1.000000e+00 : f32
    %59 = vector.broadcast %cst_26 : f32 to vector<1x128xf32>
    %60 = arith.subf %59, %58 : vector<1x128xf32>
    %cst_27 = arith.constant 0.000000e+00 : f32
    %61 = vector.broadcast %cst_27 : f32 to vector<1x128xf32>
    %62 = arith.maximumf %60, %61 : vector<1x128xf32>
    %cst_28 = arith.constant 1.000000e+00 : f32
    %63 = vector.broadcast %cst_28 : f32 to vector<1x128xf32>
    %64 = arith.mulf %63, %62 : vector<1x128xf32>
    %65 = arith.mulf %64, %62 : vector<1x128xf32>
    %cst_29 = arith.constant 1.000000e+00 : f32
    %66 = vector.broadcast %cst_29 : f32 to vector<1x128xf32>
    %67 = arith.mulf %66, %65 : vector<1x128xf32>
    %68 = arith.mulf %67, %52 : vector<1x128xf32>
    %c0_i32_30 = arith.constant 0 : i32
    %69 = arith.cmpi slt, %arg0, %c0_i32_30 : i32
    %70 = arith.extui %69 : i1 to i32
    %c0_i32_31 = arith.constant 0 : i32
    %71 = arith.cmpi ne, %70, %c0_i32_31 : i32
    scf.if %71 {
      %75 = vector.shape_cast %68 : vector<1x128xf32> to vector<1x1x128xf32>
      %cst_34 = arith.constant dense<0.000000e+00> : vector<1xf32>
      %76 = vector.multi_reduction <add>, %75, %cst_34 [1, 2] : vector<1x1x128xf32> to vector<1xf32>
      %77 = vector.shape_cast %76 : vector<1xf32> to vector<1x1x1xf32>
      %78 = vector.extract %77[0, 0, 0] : f32 from vector<1x1x1xf32>
      %c0_35 = arith.constant 0 : index
      %c0_36 = arith.constant 0 : index
      %79 = memref.load %arg3[%c0_35, %c0_36] : memref<1x1xf32, #tpu.memory_space<smem>>
      memref.store %78, %arg3[%c0_35, %c0_36] : memref<1x1xf32, #tpu.memory_space<smem>>
    } else {
    }
    %c0_i32_32 = arith.constant 0 : i32
    %72 = arith.cmpi eq, %arg0, %c0_i32_32 : i32
    %73 = arith.extui %72 : i1 to i32
    %c0_i32_33 = arith.constant 0 : i32
    %74 = arith.cmpi ne, %73, %c0_i32_33 : i32
    scf.if %74 {
      %75 = tpu.iota {dimensions = array<i32: 0>} : vector<1x128xi32>
      %76 = tpu.iota {dimensions = array<i32: 1>} : vector<1x128xi32>
      %c128_i32 = arith.constant 128 : i32
      %77 = arith.muli %arg0, %c128_i32 : i32
      %c128_i32_34 = arith.constant 128 : i32
      %78 = vector.broadcast %c128_i32_34 : i32 to vector<1x128xi32>
      %79 = arith.muli %75, %78 : vector<1x128xi32>
      %80 = vector.broadcast %77 : i32 to vector<1x128xi32>
      %81 = arith.addi %80, %79 : vector<1x128xi32>
      %82 = arith.addi %81, %76 : vector<1x128xi32>
      %c8_i32 = arith.constant 8 : i32
      %83 = vector.broadcast %c8_i32 : i32 to vector<1x128xi32>
      %84 = arith.cmpi slt, %82, %83 : vector<1x128xi32>
      %cst_35 = arith.constant 0.000000e+00 : f32
      %85 = vector.broadcast %cst_35 : f32 to vector<1x128xf32>
      %86 = arith.select %84, %68, %85 : vector<1x128xi1>, vector<1x128xf32>
      %87 = vector.shape_cast %86 : vector<1x128xf32> to vector<1x1x128xf32>
      %cst_36 = arith.constant dense<0.000000e+00> : vector<1xf32>
      %88 = vector.multi_reduction <add>, %87, %cst_36 [1, 2] : vector<1x1x128xf32> to vector<1xf32>
      %89 = vector.shape_cast %88 : vector<1xf32> to vector<1x1x1xf32>
      %90 = vector.extract %89[0, 0, 0] : f32 from vector<1x1x1xf32>
      %c0_37 = arith.constant 0 : index
      %c0_38 = arith.constant 0 : index
      %91 = memref.load %arg3[%c0_37, %c0_38] : memref<1x1xf32, #tpu.memory_space<smem>>
      memref.store %90, %arg3[%c0_37, %c0_38] : memref<1x1xf32, #tpu.memory_space<smem>>
    } else {
    }
    return
  }
  func.func @transform_0(%arg0: i32) -> (i32, i32, i32) {
    %c0_i32 = arith.constant 0 : i32
    %c0_i32_0 = arith.constant 0 : i32
    %c0_i32_1 = arith.constant 0 : i32
    return %c0_i32, %arg0, %c0_i32_0 : i32, i32, i32
  }
  func.func @transform_1(%arg0: i32) -> (i32, i32) {
    %c0_i32 = arith.constant 0 : i32
    %c0_i32_0 = arith.constant 0 : i32
    return %arg0, %c0_i32 : i32, i32
  }
  func.func @transform_2(%arg0: i32) -> (i32, i32) {
    %c0_i32 = arith.constant 0 : i32
    %c0_i32_0 = arith.constant 0 : i32
    return %arg0, %c0_i32 : i32, i32
  }
}

</mosaic_0001>

<bundles_post_ra>
// kernel: focal_loss.2
= control target key start
LH: loop header
LB: loop body
LE: loop exit
PB: predicated region body
PF: predicated region fallthrough
CT: control target
= control target key end

     0   :  { %s214_s0 = inlined_call_operand.vmem [shape: f32[3,128], index: 0, kind: input, shape index: {}]   ;;  %s215_s1 = inlined_call_operand.vmem [shape: s32[8], index: 1, kind: input, shape index: {}]   ;;  %s216_s2 = inlined_call_operand.<no memory space> [shape: s32[], index: 2, kind: input, shape index: {}]   ;;  %s217_s3 = inlined_call_operand.hbm [shape: f32[1,1], index: 3, kind: output, shape index: {}]  }
   0x1   :  { %v8_v0 = vstv %s216_s2 }
   0x2   :  { %v14_v1 = vld [vmem:[%s214_s0] ss:$0 sm:$0xff]  ;;  %v139_v2 = vld [vmem:[%s214_s0 + $0x1] ss:$0 sm:$0xff]  ;;  %v140_v3 = vld [vmem:[%s214_s0 + $0x2] ss:$0 sm:$0xff]  ;;  %v28_v4 = vlaneseq }
   0x3   :  { %16 = vst [vmem:[#allocation9] sm:$0x1] %v14_v1  ;;  %21 = vst [vmem:[#allocation9 + $0x1] sm:$0x1] %v139_v2  ;;  %v27_v5 = vld [vmem:[%s215_s1] sm:$0x1] }
   0x4   :  { %26 = vst [vmem:[#allocation9 + $0x2] sm:$0x1] %v140_v3 }
   0x5   :  { %9 = vsyncpa [#allocation8], 0  ;;  %vm30_vm0 = vcmp.lt.s32.totalorder %v28_v4, 8  ;;  %v103_v32 = vshrl.u32 %v28_v4, 7  ;;  %v105_v39 = vand.u32 127, %v28_v4  ;;  %vm113_vm5 = vcmask 1040384  }
   0x6   :  { %v31_v6 = vsel %vm30_vm0, %v27_v5, %v8_v0  ;;  %s154_s22 = scalar_lea.hbm %s217_s3, 16 }
   0x7   :  { %33 = vst [vmem:[#allocation10] sm:$0x1] %v31_v6  ;;  %v107_v40 = vmul.u32 128, %v103_v32  ;;  %p155_p0 = scmp.ne.s32.totalorder %s217_s3, %s154_s22  ;;  %p158_p1 = scmp.lt.u32.totalorder %s154_s22, %s217_s3 }
   0x9   :  { %v110_v45 = vadd.s32 %v107_v40, %v105_v39  ;;  %p160_p2 = pnand %p158_p1, %p155_p0 }
   0xa   :  { %v35_v7 = vld [vmem:[#allocation9] sm:$0x1]  ;;  %v37_v8 = vld [vmem:[#allocation9 + $0x1] sm:$0x1] }
   0xb   :  { %v40_v9 = vld [vmem:[#allocation9 + $0x2] sm:$0x1]  ;;  %v38_v10 = vmax.f32 %v35_v7, %v37_v8  ;;  %vm111_vm4 = vcmp.lt.s32.totalorder %v110_v45, 8 }
   0xd   :  { %v41_v11 = vmax.f32 %v38_v10, %v40_v9 }
   0xe   :  { %v34_v23 = vld [vmem:[#allocation10] sm:$0x1] }
   0xf   :  { %v42_v12 = vsub.f32 %v35_v7, %v41_v11  ;;  %v51_v13 = vsub.f32 %v37_v8, %v41_v11  ;;  %v60_v14 = vsub.f32 %v40_v9, %v41_v11  ;;  %vm45_vm1 = vcmp.eq.s32.totalorder %v34_v23, 0 }
  0x10   :  { %vm54_vm2 = vcmp.eq.s32.totalorder %v34_v23, 1  ;;  %vm63_vm3 = vcmp.eq.s32.totalorder %v34_v23, 2 }
  0x11   :  { %v43_v15 = vmul.f32 1.442695, %v42_v12  ;;  %v52_v16 = vmul.f32 1.442695, %v51_v13  ;;  %v61_v17 = vmul.f32 1.442695, %v60_v14 }
  0x12   :  { %v49_v28 = vsel %vm45_vm1, %v42_v12, 0.0  ;;  %v58_v29 = vsel %vm54_vm2, %v51_v13, 0.0  ;;  %v67_v37 = vsel %vm63_vm3, %v60_v14, 0.0 }
  0x13   :  { %144 = vpow2.f32 %v43_v15  ;;  %v59_v33 = vadd.f32 %v58_v29, %v49_v28 }
  0x14   :  { %146 = vpow2.f32 %v52_v16 }
  0x15   :  { %148 = vpow2.f32 %v61_v17  ;;  %v68_v41 = vadd.f32 %v67_v37, %v59_v33 }
  0x1d   :  { %v145_v18 = vpop.eup %144 }
  0x1e   :  { %v147_v19 = vpop.eup %146  ;;  %v47_v24 = vsel %vm45_vm1, %v145_v18, 0.0 }
  0x1f   :  { %v149_v20 = vpop.eup %148  ;;  %v55_v21 = vadd.f32 %v147_v19, %v145_v18  ;;  %v56_v25 = vsel %vm54_vm2, %v147_v19, 0.0 }
  0x20   :  { %v57_v26 = vadd.f32 %v56_v25, %v47_v24  ;;  %v65_v30 = vsel %vm63_vm3, %v149_v20, 0.0 }
  0x21   :  { %v64_v22 = vadd.f32 %v149_v20, %v55_v21 }
  0x22   :  { %v66_v34 = vadd.f32 %v65_v30, %v57_v26 }
  0x23   :  { %150 = vrcp.f32 %v64_v22 }
  0x24   :  { %152 = vlog2.f32 %v64_v22 }
  0x2d   :  { %v151_v27 = vpop.eup %150 }
  0x2e   :  { %v73_v31 = vmul.f32 %v151_v27, %v64_v22  ;;  %v153_v36 = vpop.eup %152 }
  0x2f   :  { %v70_v42 = vmul.f32 0.6931472, %v153_v36 }
  0x30   :  { %v74_v35 = vsub.f32 2.0, %v73_v31 }
  0x31   :  { %v71_v46 = vsub.f32 %v70_v42, %v68_v41 }
  0x32   :  { %v75_v38 = vmul.f32 %v151_v27, %v74_v35 }
  0x34   :  { %v76_v43 = vmul.f32 %v75_v38, %v66_v34 }
  0x36   :  { %v77_v44 = vsub.f32 1.0, %v76_v43 }
  0x38   :  { %v78_v47 = vmax.f32 %v77_v44, 0.0 }
  0x3a   :  { %v79_v48 = vmul.f32 %v78_v47, %v78_v47 }
  0x3c   :  { %v80_v49 = vmul.f32 %v79_v48, %v71_v46 }
  0x3e   :  { %v112_v50 = vsel %vm111_vm4, %v80_v49, 0.0 }
  0x3f   :  { %v114_v51 = vsel %vm113_vm5, %v112_v50, 0.0 }
  0x40   :  { %115 = vadd.xlane.f32.xlu0 %v114_v51 }
  0xcd   :  { %v116_v52 = vpop.xlane.xlu0 %115 }
  0xce   :  { %v117_v53 = vrot.slane %v116_v52, 4 }
  0xd0   :  { %v118_v54 = vadd.f32 %v117_v53, %v116_v52 }
  0xd2   :  { %v119_v55 = vrot.slane %v118_v54, 2 }
  0xd4   :  { %v120_v56 = vadd.f32 %v119_v55, %v118_v54 }
  0xd6   :  { %v121_v57 = vrot.slane %v120_v56, 1 }
  0xd8   :  { %v122_v58 = vadd.f32 %v121_v57, %v120_v56 }
  0xda   :  { %141 = vpush %v122_v58 }
 0x10b   :  { %s142_s0 = spop %141 }
 0x10c   :  { %125 = sst [smem:[#allocation7]] %s142_s0 }
 0x10d   :  { %163 = shalt.err (!%p160_p2)
}
 0x10e   :  { %s166_s27 = smov [#allocation7]  }
 0x10f   :  { %133 = dma.smem_to_hbm %s166_s27, 16, %s217_s3, [#allocation8]  }
 0x110   :  { %164 = dma.done.wait [#allocation8], 16  }
 0x111   :  { %165 = vsyncadd [#allocation8], 4294967280 }
 0x112   :  { %137 = sfence }
 0x113   :  { %138 = vsyncpa [#allocation8], 1 }

</bundles_post_ra>
